<compile_context>
chip_gen: v7x
topology: tpu7x:2x2x1
jax: 0.10.0
libtpu: 0.0.40
codegen_flags: <defaults>
</compile_context>

<pallas_src>
import math
import jax
import jax.numpy as jnp
from jax.experimental import pallas as pl
from jax.experimental.pallas import tpu as pltpu


def _qa_head_kernel(x_ref, w1_ref, b1_ref, w2t_ref, b2t_ref, out_ref):
    # x_ref:   (tm, D)  input feature tile (f32 or bf16)
    # w1_ref:  (D,  H)  first linear weight (same dtype as x)
    # b1_ref:  (1,  H)  first linear bias (f32)
    # w2t_ref: (8,  H)  fused [start, end] head weight, transposed, zero-padded to 8 rows
    # b2t_ref: (2,  1)  fused [start, end] head bias (column)
    # out_ref: (2, tm)  lane-dense [start; end] logit tile
    h = jnp.dot(x_ref[...], w1_ref[...], preferred_element_type=jnp.float32)
    h = jnp.maximum(h + b1_ref[...], 0.0)          # ReLU; dropout = identity (eval)
    # (8, H) . (tm, H)^T -> (8, tm); rows 2..7 of the lhs are zero padding.
    out_t = jax.lax.dot_general(
        w2t_ref[...], h,
        dimension_numbers=(((1,), (1,)), ((), ())),
        preferred_element_type=jnp.float32)
    out_ref[...] = (out_t[:2, :] + b2t_ref[...]).astype(out_ref.dtype)


def _fuse_head_params(params):
    """Fold qa_start / qa_end linears into a single transposed (2, H) matmul.

    s = h @ ws + bs
    e = h @ weh + s * wes + be = h @ (weh + wes*ws) + (wes*bs + be)
    (Valid for logit_size == 1 only: wes collapses to a scalar.)
    """
    w1, b1, ws, bs, weh, wes, be = params
    assert ws.shape[1] == 1, "fused head assumes logit_size == 1"
    H = w1.shape[1]
    wes_s = wes[0, 0]
    w_e_eff = weh + wes_s * ws                       # (H, 1)
    b_e_eff = wes_s * bs + be                        # (1, 1)
    # Transposed, zero-padded to the native 8 sublanes so the tiny second
    # matmul has a safe MXU shape.
    w2t = jnp.zeros((8, H), jnp.float32)
    w2t = w2t.at[0, :].set(ws[:, 0]).at[1, :].set(w_e_eff[:, 0])
    b2t = jnp.concatenate([bs, b_e_eff], axis=0)     # (2, 1)
    return w1, b1, w2t, b2t


def _pick_block_rows(n, d, itemsize):
    """Row-tile size: lane-dense (multiple of 128), ~4 MiB of x per tile."""
    if n < 128:
        return int(n)                                # single full-extent block
    tm = (4 << 20) // max(1, d * itemsize)           # ~4 MiB x tile
    tm = max(256, min(tm, 8192))
    tm = (tm // 128) * 128
    if n >= 256:
        # Let the row axis split across both TensorCores (v7x megacore).
        half = pl.cdiv(pl.cdiv(n, 2), 128) * 128
        tm = min(tm, half)
    tm = min(tm, pl.cdiv(n, 128) * 128)              # never bigger than one padded pass
    return int(tm)


def _build_head_call(N, D, H, tm, x_dtype, *, single_buffer_weights, vmem_limit):
    n_steps = pl.cdiv(N, tm)

    def _const(i):
        return (0, 0)

    if single_buffer_weights:
        def const_spec(shape):
            return pl.BlockSpec(shape, _const, pipeline_mode=pl.Buffered(1))
    else:
        def const_spec(shape):
            return pl.BlockSpec(shape, _const)

    x_bytes = jnp.dtype(x_dtype).itemsize
    cost = pl.CostEstimate(
        flops=2 * N * D * H + 2 * N * H * 2,
        transcendentals=0,
        bytes_accessed=(N * D * x_bytes + D * H * x_bytes
                        + (H + 8 * H + 2) * 4 + 2 * N * 4))

    return pl.pallas_call(
        _qa_head_kernel,
        out_shape=jax.ShapeDtypeStruct((2, N), jnp.float32),
        grid_spec=pltpu.PrefetchScalarGridSpec(
            num_scalar_prefetch=0,
            grid=(n_steps,),
            in_specs=[
                pl.BlockSpec((tm, D), lambda i: (i, 0)),   # x tile (pipelined)
                const_spec((D, H)),                        # W1
                const_spec((1, H)),                        # b1
                const_spec((8, H)),                        # fused W2^T (row-padded)
                const_spec((2, 1)),                        # fused b2 (column)
            ],
            out_specs=pl.BlockSpec((2, tm), lambda i: (0, i)),
        ),
        compiler_params=pltpu.CompilerParams(
            dimension_semantics=("parallel",),
            vmem_limit_bytes=vmem_limit),
        cost_estimate=cost,
    )


def qa_conditional_prediction_head(x, params):
    """x: (batch, seq, input_size) f32 or bf16. Returns (batch, seq, 2) f32 logits."""
    B, S, D = x.shape
    N = B * S
    x2 = x.reshape(N, D)                     # metadata-only reshape

    w1, b1, w2t, b2t = _fuse_head_params(params)
    H = w1.shape[1]
    # bf16 activations are MXU-native on v6e/v7x; cast the small W1 to match.
    w1 = w1.astype(x2.dtype)

    itemsize = x2.dtype.itemsize
    tm = _pick_block_rows(N, D, itemsize)

    vmem_need = (2 * tm * D * itemsize               # double-buffered x tile
                 + D * H * itemsize + H * 4          # W1 + b1 (single buffer)
                 + 8 * H * 4 + 8 * 4                 # fused head weight/bias
                 + 2 * 2 * tm * 4)                   # double-buffered output tile
    vmem_limit = int(min(48 << 20, max(16 << 20, 2 * vmem_need + (4 << 20))))

    args = (x2, w1, b1, w2t, b2t)
    try:
        call = _build_head_call(N, D, H, tm, x2.dtype,
                                single_buffer_weights=True, vmem_limit=vmem_limit)
        out_t = jax.block_until_ready(call(*args))
    except Exception:
        # pl.Buffered(1) on inputs unsupported on this jax version -> default buffering.
        call = _build_head_call(N, D, H, tm, x2.dtype,
                                single_buffer_weights=False, vmem_limit=vmem_limit)
        out_t = call(*args)

    return out_t.T.reshape(B, S, 2)          # cheap (2,N)->(N,2) transpose in XLA


def init_params(key, input_size, hidden_size=64, logit_size=1):
    """Deterministic xavier_uniform weights / zero biases (PyTorch-equivalent)."""
    k1, k2, k3 = jax.random.split(key, 3)

    def xavier(k, fan_in, fan_out):
        a = math.sqrt(6.0 / (fan_in + fan_out))
        # PyTorch weight layout is (out, in); generate there and transpose to (in, out).
        w = jax.random.uniform(k, (fan_out, fan_in), jnp.float32, -a, a)
        return w.T

    w1 = xavier(k1, input_size, hidden_size)                 # (D, H)
    b1 = jnp.zeros((1, hidden_size), jnp.float32)

    w_start = xavier(k2, hidden_size, logit_size)            # (H, 1)
    b_start = jnp.zeros((1, 1), jnp.float32)

    w_end_full = xavier(k3, hidden_size + 1, logit_size)     # (H+1, 1)
    w_end_h = w_end_full[:hidden_size, :]                    # (H, 1)
    w_end_s = w_end_full[hidden_size:, :]                    # (1, 1)
    b_end = jnp.zeros((1, 1), jnp.float32)

    return (w1, b1, w_start, b_start, w_end_h, w_end_s, b_end)


def reference_forward(x, params):
    """Pure-JAX reference of the PyTorch module (eval mode)."""
    w1, b1, ws, bs, weh, wes, be = params
    h = jax.nn.relu(x @ w1 + b1[0])
    s = h @ ws + bs[0]
    e = jnp.concatenate([h, s], axis=-1) @ jnp.concatenate([weh, wes], axis=0) + be[0]
    return jnp.concatenate([s, e], axis=-1)


if __name__ == "__main__":
    key = jax.random.PRNGKey(0)
    kx, kp, kx2 = jax.random.split(key, 3)

    input_size, hidden_size = 32, 64
    params = init_params(kp, input_size, hidden_size)

    # Small shape from the module spec (single full-extent block).
    x = jax.random.normal(kx, (2, 8, input_size), jnp.float32)
    logits = jax.block_until_ready(qa_conditional_prediction_head(x, params))
    ref = reference_forward(x, params)
    assert logits.shape == (2, 8, 2)
    assert jnp.allclose(logits, ref, atol=1e-5, rtol=1e-5), "mismatch vs reference"

    # Ragged, multi-step grid (N % tm != 0) to validate masked tail writes.
    x2 = jax.random.normal(kx2, (4, 200, input_size), jnp.float32)
    logits2 = jax.block_until_ready(qa_conditional_prediction_head(x2, params))
    ref2 = reference_forward(x2, params)
    assert logits2.shape == (4, 200, 2)
    assert jnp.allclose(logits2, ref2, atol=1e-5, rtol=1e-5), "mismatch vs reference (ragged)"

    print("KERNEL_OK")
</pallas_src>

<mosaic_0001>
module attributes {stable_mosaic.version = 11 : i64} {
  func.func @_qa_head_kernel(%arg0: i32, %arg1: memref<16x32xf32, #tpu.memory_space<vmem>>, %arg2: memref<32x64xf32, #tpu.memory_space<vmem>>, %arg3: memref<1x64xf32, #tpu.memory_space<vmem>>, %arg4: memref<8x64xf32, #tpu.memory_space<vmem>>, %arg5: memref<2x1xf32, #tpu.memory_space<vmem>>, %arg6: memref<2x16xf32, #tpu.memory_space<vmem>>) attributes {dimension_semantics = [#tpu.dimension_semantics<parallel>], iteration_bounds = array<i64: 1>, scalar_prefetch = 0 : i64, scratch_operands = 0 : i64, tpu.core_type = #tpu.core_type<tc>, window_params = [{transform_indices = @transform_0, window_bounds = array<i64: 16, 32>}, {pipeline_mode = #tpu.pipeline_mode<synchronous>, transform_indices = @transform_1, window_bounds = array<i64: 32, 64>}, {pipeline_mode = #tpu.pipeline_mode<synchronous>, transform_indices = @transform_2, window_bounds = array<i64: 1, 64>}, {pipeline_mode = #tpu.pipeline_mode<synchronous>, transform_indices = @transform_3, window_bounds = array<i64: 8, 64>}, {pipeline_mode = #tpu.pipeline_mode<synchronous>, transform_indices = @transform_4, window_bounds = array<i64: 2, 1>}, {transform_indices = @transform_5, window_bounds = array<i64: 2, 16>}]} {
    %c0 = arith.constant 0 : index
    %c0_0 = arith.constant 0 : index
    %0 = vector.load %arg1[%c0, %c0_0] : memref<16x32xf32, #tpu.memory_space<vmem>>, vector<16x32xf32>
    %c0_1 = arith.constant 0 : index
    %c0_2 = arith.constant 0 : index
    %1 = vector.load %arg2[%c0_1, %c0_2] : memref<32x64xf32, #tpu.memory_space<vmem>>, vector<32x64xf32>
    %cst = arith.constant dense<0.000000e+00> : vector<16x64xf32>
    %2 = tpu.matmul %0, %1, %cst {dimension_numbers = #tpu.dot_dimension_numbers<[1], [0], [0], [1], [0, 0, 1, 1], [], []>} : vector<16x32xf32>, vector<32x64xf32>, vector<16x64xf32> -> vector<16x64xf32>
    %c0_3 = arith.constant 0 : index
    %c0_4 = arith.constant 0 : index
    %3 = vector.load %arg3[%c0_3, %c0_4] : memref<1x64xf32, #tpu.memory_space<vmem>>, vector<1x64xf32>
    %4 = vector.broadcast %3 : vector<1x64xf32> to vector<16x64xf32>
    %5 = arith.addf %2, %4 : vector<16x64xf32>
    %cst_5 = arith.constant 0.000000e+00 : f32
    %6 = vector.broadcast %cst_5 : f32 to vector<16x64xf32>
    %7 = arith.maximumf %5, %6 : vector<16x64xf32>
    %c0_6 = arith.constant 0 : index
    %c0_7 = arith.constant 0 : index
    %8 = vector.load %arg4[%c0_6, %c0_7] : memref<8x64xf32, #tpu.memory_space<vmem>>, vector<8x64xf32>
    %cst_8 = arith.constant dense<0.000000e+00> : vector<8x16xf32>
    %9 = tpu.matmul %8, %7, %cst_8 {dimension_numbers = #tpu.dot_dimension_numbers<[1], [1], [0], [0], [0, 0, 1, 0], [], []>} : vector<8x64xf32>, vector<16x64xf32>, vector<8x16xf32> -> vector<8x16xf32>
    %10 = vector.extract_strided_slice %9 {offsets = [0, 0], sizes = [2, 16], strides = [1, 1]} : vector<8x16xf32> to vector<2x16xf32>
    %c0_9 = arith.constant 0 : index
    %c0_10 = arith.constant 0 : index
    %11 = vector.load %arg5[%c0_9, %c0_10] : memref<2x1xf32, #tpu.memory_space<vmem>>, vector<2x1xf32>
    %12 = vector.broadcast %11 : vector<2x1xf32> to vector<2x16xf32>
    %13 = arith.addf %10, %12 : vector<2x16xf32>
    %c0_11 = arith.constant 0 : index
    %c0_12 = arith.constant 0 : index
    %14 = vector.load %arg6[%c0_11, %c0_12] : memref<2x16xf32, #tpu.memory_space<vmem>>, vector<2x16xf32>
    tpu.vector_store %arg6[%c0_11, %c0_12], %13 {strides = array<i32>} : memref<2x16xf32, #tpu.memory_space<vmem>>, vector<2x16xf32>,
    return
  }
  func.func @transform_0(%arg0: i32) -> (i32, i32) {
    %c0_i32 = arith.constant 0 : i32
    %c0_i32_0 = arith.constant 0 : i32
    return %arg0, %c0_i32 : i32, i32
  }
  func.func @transform_1(%arg0: i32) -> (i32, i32) {
    %c0_i32 = arith.constant 0 : i32
    %c0_i32_0 = arith.constant 0 : i32
    %c0_i32_1 = arith.constant 0 : i32
    return %c0_i32, %c0_i32_0 : i32, i32
  }
  func.func @transform_2(%arg0: i32) -> (i32, i32) {
    %c0_i32 = arith.constant 0 : i32
    %c0_i32_0 = arith.constant 0 : i32
    %c0_i32_1 = arith.constant 0 : i32
    return %c0_i32, %c0_i32_0 : i32, i32
  }
  func.func @transform_3(%arg0: i32) -> (i32, i32) {
    %c0_i32 = arith.constant 0 : i32
    %c0_i32_0 = arith.constant 0 : i32
    %c0_i32_1 = arith.constant 0 : i32
    return %c0_i32, %c0_i32_0 : i32, i32
  }
  func.func @transform_4(%arg0: i32) -> (i32, i32) {
    %c0_i32 = arith.constant 0 : i32
    %c0_i32_0 = arith.constant 0 : i32
    %c0_i32_1 = arith.constant 0 : i32
    return %c0_i32, %c0_i32_0 : i32, i32
  }
  func.func @transform_5(%arg0: i32) -> (i32, i32) {
    %c0_i32 = arith.constant 0 : i32
    %c0_i32_0 = arith.constant 0 : i32
    return %c0_i32, %arg0 : i32, i32
  }
}

module attributes {stable_mosaic.version = 11 : i64} {
  func.func @_qa_head_kernel(%arg0: i32, %arg1: memref<16x32xf32, #tpu.memory_space<vmem>>, %arg2: memref<32x64xf32, #tpu.memory_space<vmem>>, %arg3: memref<1x64xf32, #tpu.memory_space<vmem>>, %arg4: memref<8x64xf32, #tpu.memory_space<vmem>>, %arg5: memref<2x1xf32, #tpu.memory_space<vmem>>, %arg6: memref<2x16xf32, #tpu.memory_space<vmem>>) attributes {dimension_semantics = [#tpu.dimension_semantics<parallel>], iteration_bounds = array<i64: 1>, scalar_prefetch = 0 : i64, scratch_operands = 0 : i64, tpu.core_type = #tpu.core_type<tc>, window_params = [{transform_indices = @transform_0, window_bounds = array<i64: 16, 32>}, {pipeline_mode = #tpu.pipeline_mode<synchronous>, transform_indices = @transform_1, window_bounds = array<i64: 32, 64>}, {pipeline_mode = #tpu.pipeline_mode<synchronous>, transform_indices = @transform_2, window_bounds = array<i64: 1, 64>}, {pipeline_mode = #tpu.pipeline_mode<synchronous>, transform_indices = @transform_3, window_bounds = array<i64: 8, 64>}, {pipeline_mode = #tpu.pipeline_mode<synchronous>, transform_indices = @transform_4, window_bounds = array<i64: 2, 1>}, {transform_indices = @transform_5, window_bounds = array<i64: 2, 16>}]} {
    %c0 = arith.constant 0 : index
    %c0_0 = arith.constant 0 : index
    %0 = vector.load %arg1[%c0, %c0_0] : memref<16x32xf32, #tpu.memory_space<vmem>>, vector<16x32xf32>
    %c0_1 = arith.constant 0 : index
    %c0_2 = arith.constant 0 : index
    %1 = vector.load %arg2[%c0_1, %c0_2] : memref<32x64xf32, #tpu.memory_space<vmem>>, vector<32x64xf32>
    %cst = arith.constant dense<0.000000e+00> : vector<16x64xf32>
    %2 = tpu.matmul %0, %1, %cst {dimension_numbers = #tpu.dot_dimension_numbers<[1], [0], [0], [1], [0, 0, 1, 1], [], []>} : vector<16x32xf32>, vector<32x64xf32>, vector<16x64xf32> -> vector<16x64xf32>
    %c0_3 = arith.constant 0 : index
    %c0_4 = arith.constant 0 : index
    %3 = vector.load %arg3[%c0_3, %c0_4] : memref<1x64xf32, #tpu.memory_space<vmem>>, vector<1x64xf32>
    %4 = vector.broadcast %3 : vector<1x64xf32> to vector<16x64xf32>
    %5 = arith.addf %2, %4 : vector<16x64xf32>
    %cst_5 = arith.constant 0.000000e+00 : f32
    %6 = vector.broadcast %cst_5 : f32 to vector<16x64xf32>
    %7 = arith.maximumf %5, %6 : vector<16x64xf32>
    %c0_6 = arith.constant 0 : index
    %c0_7 = arith.constant 0 : index
    %8 = vector.load %arg4[%c0_6, %c0_7] : memref<8x64xf32, #tpu.memory_space<vmem>>, vector<8x64xf32>
    %cst_8 = arith.constant dense<0.000000e+00> : vector<8x16xf32>
    %9 = tpu.matmul %8, %7, %cst_8 {dimension_numbers = #tpu.dot_dimension_numbers<[1], [1], [0], [0], [0, 0, 1, 0], [], []>} : vector<8x64xf32>, vector<16x64xf32>, vector<8x16xf32> -> vector<8x16xf32>
    %10 = vector.extract_strided_slice %9 {offsets = [0, 0], sizes = [2, 16], strides = [1, 1]} : vector<8x16xf32> to vector<2x16xf32>
    %c0_9 = arith.constant 0 : index
    %c0_10 = arith.constant 0 : index
    %11 = vector.load %arg5[%c0_9, %c0_10] : memref<2x1xf32, #tpu.memory_space<vmem>>, vector<2x1xf32>
    %12 = vector.broadcast %11 : vector<2x1xf32> to vector<2x16xf32>
    %13 = arith.addf %10, %12 : vector<2x16xf32>
    %c0_11 = arith.constant 0 : index
    %c0_12 = arith.constant 0 : index
    %14 = vector.load %arg6[%c0_11, %c0_12] : memref<2x16xf32, #tpu.memory_space<vmem>>, vector<2x16xf32>
    tpu.vector_store %arg6[%c0_11, %c0_12], %13 {strides = array<i32>} : memref<2x16xf32, #tpu.memory_space<vmem>>, vector<2x16xf32>,
    return
  }
  func.func @transform_0(%arg0: i32) -> (i32, i32) {
    %c0_i32 = arith.constant 0 : i32
    %c0_i32_0 = arith.constant 0 : i32
    return %arg0, %c0_i32 : i32, i32
  }
  func.func @transform_1(%arg0: i32) -> (i32, i32) {
    %c0_i32 = arith.constant 0 : i32
    %c0_i32_0 = arith.constant 0 : i32
    %c0_i32_1 = arith.constant 0 : i32
    return %c0_i32, %c0_i32_0 : i32, i32
  }
  func.func @transform_2(%arg0: i32) -> (i32, i32) {
    %c0_i32 = arith.constant 0 : i32
    %c0_i32_0 = arith.constant 0 : i32
    %c0_i32_1 = arith.constant 0 : i32
    return %c0_i32, %c0_i32_0 : i32, i32
  }
  func.func @transform_3(%arg0: i32) -> (i32, i32) {
    %c0_i32 = arith.constant 0 : i32
    %c0_i32_0 = arith.constant 0 : i32
    %c0_i32_1 = arith.constant 0 : i32
    return %c0_i32, %c0_i32_0 : i32, i32
  }
  func.func @transform_4(%arg0: i32) -> (i32, i32) {
    %c0_i32 = arith.constant 0 : i32
    %c0_i32_0 = arith.constant 0 : i32
    %c0_i32_1 = arith.constant 0 : i32
    return %c0_i32, %c0_i32_0 : i32, i32
  }
  func.func @transform_5(%arg0: i32) -> (i32, i32) {
    %c0_i32 = arith.constant 0 : i32
    %c0_i32_0 = arith.constant 0 : i32
    return %c0_i32, %arg0 : i32, i32
  }
}

</mosaic_0001>

<bundles_post_ra>
// kernel: tpu_custom_call.1
= control target key start
LH: loop header
LB: loop body
LE: loop exit
PB: predicated region body
PF: predicated region fallthrough
CT: control target
= control target key end

     0   :  { %10 = vsyncpa [#allocation3], 0  ;;  %s463_s0 = inlined_call_operand.hbm [shape: f32[16,32], index: 0, kind: input, shape index: {}]   ;;  %s464_s1 = inlined_call_operand.hbm [shape: f32[32,64], index: 1, kind: input, shape index: {}]   ;;  %s465_s2 = inlined_call_operand.vmem [shape: f32[1,64], index: 2, kind: input, shape index: {}]   ;;  %s466_s3 = inlined_call_operand.vmem [shape: f32[8,64], index: 3, kind: input, shape index: {}]   ;;  %s467_s4 = inlined_call_operand.vmem [shape: f32[2,1], index: 4, kind: input, shape index: {}]   ;;  %s468_s5 = inlined_call_operand.hbm [shape: f32[2,16], index: 5, kind: output, shape index: {}]  }
   0x1   :  { %11 = vsyncpa [#allocation6], 0 }
   0x2   :  { %12 = vsyncpa [#allocation4], 0  ;;  %s379_s18 = smov [#allocation2]   ;;  %s307_s22 = scalar_lea.hbm %s463_s0, 256 }
   0x3   :  { %s18_s19 = sshll.u32 %s379_s18, 4  ;;  %p308_p0 = scmp.ne.s32.totalorder %s463_s0, %s307_s22  ;;  %s19_s19 = int_to_ptr.vmem [resolvable:$true] %s18_s19 }
   0x4   :  { %p311_p1 = scmp.lt.u32.totalorder %s307_s22, %s463_s0 }
   0x6   :  { %p313_p2 = pnand %p311_p1, %p308_p0 }
   0x8   :  { %316 = shalt.err (!%p313_p2)
}
   0x9   :  { %s317_s27 = scalar_lea.vmem %s19_s19, 256  ;;  %p322_p4 = scmp.lt.s32.totalorder %s19_s19, %s19_s19 }
   0xa   :  { %p318_p3 = scmp.ne.s32.totalorder %s19_s19, %s317_s27  ;;  %p323_p5 = scmp.lt.s32.totalorder %s317_s27, %s317_s27 }
   0xc   :  { %p324_p6 = por %p323_p5, %p322_p4 }
   0xe   :  { %p325_p7 = pnand %p324_p6, %p318_p3 }
  0x10   :  { %328 = shalt.err (!%p325_p7)
}
  0x11   :  { %s380_s28 = smov 128   ;;  %s381_s29 = smov 8  }
  0x12   :  { %24 = dma.hbm_to_vmem [thread:$0]  %s463_s0, 256, %s19_s19, [#allocation3], %s380_s28, %s380_s28, %s381_s29  }
  0x13   :  { %s382_s7 = smov [#allocation5]   ;;  %s329_s11 = scalar_lea.hbm %s464_s1, 512 }
  0x14   :  { %s30_s8 = sshll.u32 %s382_s7, 4  ;;  %p330_p8 = scmp.ne.s32.totalorder %s464_s1, %s329_s11  ;;  %s31_s8 = int_to_ptr.vmem [resolvable:$true] %s30_s8 }
  0x15   :  { %p333_p9 = scmp.lt.u32.totalorder %s329_s11, %s464_s1 }
  0x17   :  { %p335_p10 = pnand %p333_p9, %p330_p8 }
  0x19   :  { %338 = shalt.err (!%p335_p10)
}
  0x1a   :  { %s339_s16 = scalar_lea.vmem %s31_s8, 512  ;;  %p344_p12 = scmp.lt.s32.totalorder %s31_s8, %s31_s8 }
  0x1b   :  { %p340_p11 = scmp.ne.s32.totalorder %s31_s8, %s339_s16  ;;  %p345_p13 = scmp.lt.s32.totalorder %s339_s16, %s339_s16 }
  0x1d   :  { %p346_p0 = por %p345_p13, %p344_p12 }
  0x1f   :  { %p347_p1 = pnand %p346_p0, %p340_p11 }
  0x21   :  { %350 = shalt.err (!%p347_p1)
}
  0x22   :  { %36 = dma.hbm_to_vmem [thread:$0]  %s464_s1, 512, %s31_s8, [#allocation6], %s380_s28, %s380_s28, %s381_s29  }
  0x23   :  { %373 = dma.done.wait [#allocation3], 256  }
  0x24   :  { %374 = vsyncadd [#allocation3], 4294967040 }
  0x25   :  { %375 = dma.done.wait [#allocation6], 512  }
  0x26   :  { %376 = vsyncadd [#allocation6], 4294966784  ;;  %vm62_vm0 = vcmask 261120   ;;  %v51_v0 = vld [vmem:[#allocation5] sm:$0xff]  ;;  %v52_v1 = vld [vmem:[#allocation5 + $0x8] sm:$0xff]  ;;  %v383_v8 = vmov 0.0|0.0  }
  0x27   :  { %v53_v2 = vld [vmem:[#allocation5 + $0x10] sm:$0xff]  ;;  %v285_v3 = vpack.c.bf16 %v52_v1, %v51_v0  ;;  %v54_v4 = vld [vmem:[#allocation5 + $0x18] sm:$0xff]  ;;  %293 = vmatprep.subr.bf16.mxu1 %v383_v8  ;;  %vm384_vm1 = vmmov 0   ;;  %v385_v9 = vmov 0.0   ;;  %v386_v11 = vmov 0  }
  0x28   :  { %v49_v5 = vld [vmem:[#allocation2] sm:$0xff]  ;;  %v289_v6 = vpack.c.bf16 %v54_v4, %v53_v2  ;;  %v50_v7 = vld [vmem:[#allocation2 + $0x8] sm:$0xff]  ;;  %282 = vmatprep.mubr.msk.f32.mxu1 %vm384_vm1, %v385_v9  ;;  %306 = vset.pattern.permute.xlu0 %v386_v11  ;;  %vm147_vm2 = vcmask 523264   ;;  %vm234_vm4 = vcmask 123904  }
  0x29   :  { %275 = vmatprep.mubr.msk.f32.mxu0 %vm62_vm0, %v49_v5  ;;  %286 = vmatprep.subr.bf16.mxu0 %v285_v3  ;;  %v227_v10 = vld [vmem:[%s467_s4] sm:$0x3]  ;;  %vm295_vm3 = vmpackc.low %vm147_vm2, %vm147_vm2  ;;  %s387_s4 = smov [#allocation7]  }
  0x2a   :  { %288 = vmatpush3.bf16.msra.mxu0 %v285_v3  ;;  %230 = vperm.xlu0 %306, %v227_v10   ;;  %v252_v12 = vld [vmem:[%s465_s2] ss:$0 sm:$0xff]  ;;  %s242_s23 = sshll.u32 %s387_s4, 4  ;;  %s243_s23 = int_to_ptr.vmem [resolvable:$true] %s242_s23 }
  0x2b   :  { %290 = vmatprep.subr.bf16.mxu0 %v289_v6  ;;  %v146_v20 = vld [vmem:[%s466_s3] sm:$0xff]  ;;  %s351_s2 = scalar_lea.vmem %s243_s23, 32  ;;  %p356_p3 = scmp.lt.s32.totalorder %s243_s23, %s243_s23 }
  0x2c   :  { %p352_p2 = scmp.ne.s32.totalorder %s243_s23, %s351_s2  ;;  %p357_p4 = scmp.lt.s32.totalorder %s351_s2, %s351_s2 }
  0x2e   :  { %292 = vmatpush3.bf16.msra.mxu0 %v289_v6  ;;  %p358_p5 = por %p357_p4, %p356_p3 }
  0x30   :  { %p359_p6 = pnand %p358_p5, %p352_p2 }
  0x31   :  { %276 = vmatmul.mubr.msk.f32.vlgmr.msra.gmra.mrb[0].mxu0 %vm62_vm0, %v50_v7 }
  0xa9   :  { %v231_v21 = vpop.permute.xlu0 %230 }
 0x104   :  { %v277_v13 = vpop.f32.mrb[0].mxu0 }
 0x105   :  { %v141_v14 = vadd.f32 %v277_v13, %v252_v12  ;;  %v135_v15 = vpop.f32.mrb[1].mxu0 }
 0x106   :  { %v136_v16 = vadd.f32 %v252_v12, %v135_v15 }
 0x107   :  { %v145_v17 = vmax.f32 %v141_v14, 0.0 }
 0x108   :  { %v144_v18 = vmax.f32 %v136_v16, 0.0 }
 0x10a   :  { %v294_v19 = vpack.c.bf16 %v145_v17, %v144_v18 }
 0x10c   :  { %296 = vmatpush3.bf16.xpose.msk.msra.mxu1 %vm295_vm3, %v294_v19 }
 0x113   :  { %283 = vmatmul.mubr.msk.f32.vlgmr.msra.gmra.mrb[0].mxu1 %vm147_vm2, %v146_v20 }
 0x1e6   :  { %v223_v22 = vpop.f32.mrb[0].mxu1 }
 0x1e7   :  { %v233_v23 = vadd.f32 %v231_v21, %v223_v22  ;;  %v284_v24 = vpop.f32.mrb[1].mxu1 }
 0x1e9   :  { %235 = vst.msk [vmem:[#allocation7] sm:$0x3] %vm234_vm4, %v233_v23 }
 0x1ea   :  { %362 = shalt.err (!%p359_p6)
}
 0x1eb   :  { %s363_s3 = scalar_lea.hbm %s468_s5, 32 }
 0x1ec   :  { %p364_p7 = scmp.ne.s32.totalorder %s468_s5, %s363_s3  ;;  %p367_p8 = scmp.lt.u32.totalorder %s363_s3, %s468_s5 }
 0x1ee   :  { %p369_p9 = pnand %p367_p8, %p364_p7 }
 0x1f0   :  { %372 = shalt.err (!%p369_p9)
}
 0x1f1   :  { %245 = dma.vmem_to_hbm [thread:$0]  %s243_s23, 32, %s468_s5, [#allocation4]  }
 0x1f2   :  { %377 = dma.done.wait [#allocation4], 32  }
 0x1f3   :  { %378 = vsyncadd [#allocation4], 4294967264 }
 0x1f4   :  { %249 = vsyncpa [#allocation3], 1 }
 0x1f5   :  { %250 = vsyncpa [#allocation6], 1 }
 0x1f6   :  { %251 = vsyncpa [#allocation4], 1 }

// kernel: tpu_custom_call.1
= control target key start
LH: loop header
LB: loop body
LE: loop exit
PB: predicated region body
PF: predicated region fallthrough
CT: control target
= control target key end

     0   :  { %10 = vsyncpa [#allocation3], 0  ;;  %s463_s0 = inlined_call_operand.hbm [shape: f32[16,32], index: 0, kind: input, shape index: {}]   ;;  %s464_s1 = inlined_call_operand.hbm [shape: f32[32,64], index: 1, kind: input, shape index: {}]   ;;  %s465_s2 = inlined_call_operand.vmem [shape: f32[1,64], index: 2, kind: input, shape index: {}]   ;;  %s466_s3 = inlined_call_operand.vmem [shape: f32[8,64], index: 3, kind: input, shape index: {}]   ;;  %s467_s4 = inlined_call_operand.vmem [shape: f32[2,1], index: 4, kind: input, shape index: {}]   ;;  %s468_s5 = inlined_call_operand.hbm [shape: f32[2,16], index: 5, kind: output, shape index: {}]  }
   0x1   :  { %11 = vsyncpa [#allocation6], 0 }
   0x2   :  { %12 = vsyncpa [#allocation4], 0  ;;  %s379_s18 = smov [#allocation2]   ;;  %s307_s22 = scalar_lea.hbm %s463_s0, 256 }
   0x3   :  { %s18_s19 = sshll.u32 %s379_s18, 4  ;;  %p308_p0 = scmp.ne.s32.totalorder %s463_s0, %s307_s22  ;;  %s19_s19 = int_to_ptr.vmem [resolvable:$true] %s18_s19 }
   0x4   :  { %p311_p1 = scmp.lt.u32.totalorder %s307_s22, %s463_s0 }
   0x6   :  { %p313_p2 = pnand %p311_p1, %p308_p0 }
   0x8   :  { %316 = shalt.err (!%p313_p2)
}
   0x9   :  { %s317_s27 = scalar_lea.vmem %s19_s19, 256  ;;  %p322_p4 = scmp.lt.s32.totalorder %s19_s19, %s19_s19 }
   0xa   :  { %p318_p3 = scmp.ne.s32.totalorder %s19_s19, %s317_s27  ;;  %p323_p5 = scmp.lt.s32.totalorder %s317_s27, %s317_s27 }
   0xc   :  { %p324_p6 = por %p323_p5, %p322_p4 }
   0xe   :  { %p325_p7 = pnand %p324_p6, %p318_p3 }
  0x10   :  { %328 = shalt.err (!%p325_p7)
}
  0x11   :  { %s380_s28 = smov 128   ;;  %s381_s29 = smov 8  }
  0x12   :  { %24 = dma.hbm_to_vmem [thread:$0]  %s463_s0, 256, %s19_s19, [#allocation3], %s380_s28, %s380_s28, %s381_s29  }
  0x13   :  { %s382_s7 = smov [#allocation5]   ;;  %s329_s11 = scalar_lea.hbm %s464_s1, 512 }
  0x14   :  { %s30_s8 = sshll.u32 %s382_s7, 4  ;;  %p330_p8 = scmp.ne.s32.totalorder %s464_s1, %s329_s11  ;;  %s31_s8 = int_to_ptr.vmem [resolvable:$true] %s30_s8 }
  0x15   :  { %p333_p9 = scmp.lt.u32.totalorder %s329_s11, %s464_s1 }
  0x17   :  { %p335_p10 = pnand %p333_p9, %p330_p8 }
  0x19   :  { %338 = shalt.err (!%p335_p10)
}
  0x1a   :  { %s339_s16 = scalar_lea.vmem %s31_s8, 512  ;;  %p344_p12 = scmp.lt.s32.totalorder %s31_s8, %s31_s8 }
  0x1b   :  { %p340_p11 = scmp.ne.s32.totalorder %s31_s8, %s339_s16  ;;  %p345_p13 = scmp.lt.s32.totalorder %s339_s16, %s339_s16 }
  0x1d   :  { %p346_p0 = por %p345_p13, %p344_p12 }
  0x1f   :  { %p347_p1 = pnand %p346_p0, %p340_p11 }
  0x21   :  { %350 = shalt.err (!%p347_p1)
}
  0x22   :  { %36 = dma.hbm_to_vmem [thread:$0]  %s464_s1, 512, %s31_s8, [#allocation6], %s380_s28, %s380_s28, %s381_s29  }
  0x23   :  { %373 = dma.done.wait [#allocation3], 256  }
  0x24   :  { %374 = vsyncadd [#allocation3], 4294967040 }
  0x25   :  { %375 = dma.done.wait [#allocation6], 512  }
  0x26   :  { %376 = vsyncadd [#allocation6], 4294966784  ;;  %vm62_vm0 = vcmask 261120   ;;  %v51_v0 = vld [vmem:[#allocation5] sm:$0xff]  ;;  %v52_v1 = vld [vmem:[#allocation5 + $0x8] sm:$0xff]  ;;  %v383_v8 = vmov 0.0|0.0  }
  0x27   :  { %v53_v2 = vld [vmem:[#allocation5 + $0x10] sm:$0xff]  ;;  %v285_v3 = vpack.c.bf16 %v52_v1, %v51_v0  ;;  %v54_v4 = vld [vmem:[#allocation5 + $0x18] sm:$0xff]  ;;  %293 = vmatprep.subr.bf16.mxu1 %v383_v8  ;;  %vm384_vm1 = vmmov 0   ;;  %v385_v9 = vmov 0.0   ;;  %v386_v11 = vmov 0  }
  0x28   :  { %v49_v5 = vld [vmem:[#allocation2] sm:$0xff]  ;;  %v289_v6 = vpack.c.bf16 %v54_v4, %v53_v2  ;;  %v50_v7 = vld [vmem:[#allocation2 + $0x8] sm:$0xff]  ;;  %282 = vmatprep.mubr.msk.f32.mxu1 %vm384_vm1, %v385_v9  ;;  %306 = vset.pattern.permute.xlu0 %v386_v11  ;;  %vm147_vm2 = vcmask 523264   ;;  %vm234_vm4 = vcmask 123904  }
  0x29   :  { %275 = vmatprep.mubr.msk.f32.mxu0 %vm62_vm0, %v49_v5  ;;  %286 = vmatprep.subr.bf16.mxu0 %v285_v3  ;;  %v227_v10 = vld [vmem:[%s467_s4] sm:$0x3]  ;;  %vm295_vm3 = vmpackc.low %vm147_vm2, %vm147_vm2  ;;  %s387_s4 = smov [#allocation7]  }
  0x2a   :  { %288 = vmatpush3.bf16.msra.mxu0 %v285_v3  ;;  %230 = vperm.xlu0 %306, %v227_v10   ;;  %v252_v12 = vld [vmem:[%s465_s2] ss:$0 sm:$0xff]  ;;  %s242_s23 = sshll.u32 %s387_s4, 4  ;;  %s243_s23 = int_to_ptr.vmem [resolvable:$true] %s242_s23 }
  0x2b   :  { %290 = vmatprep.subr.bf16.mxu0 %v289_v6  ;;  %v146_v20 = vld [vmem:[%s466_s3] sm:$0xff]  ;;  %s351_s2 = scalar_lea.vmem %s243_s23, 32  ;;  %p356_p3 = scmp.lt.s32.totalorder %s243_s23, %s243_s23 }
  0x2c   :  { %p352_p2 = scmp.ne.s32.totalorder %s243_s23, %s351_s2  ;;  %p357_p4 = scmp.lt.s32.totalorder %s351_s2, %s351_s2 }
  0x2e   :  { %292 = vmatpush3.bf16.msra.mxu0 %v289_v6  ;;  %p358_p5 = por %p357_p4, %p356_p3 }
  0x30   :  { %p359_p6 = pnand %p358_p5, %p352_p2 }
  0x31   :  { %276 = vmatmul.mubr.msk.f32.vlgmr.msra.gmra.mrb[0].mxu0 %vm62_vm0, %v50_v7 }
  0xa9   :  { %v231_v21 = vpop.permute.xlu0 %230 }
 0x104   :  { %v277_v13 = vpop.f32.mrb[0].mxu0 }
 0x105   :  { %v141_v14 = vadd.f32 %v277_v13, %v252_v12  ;;  %v135_v15 = vpop.f32.mrb[1].mxu0 }
 0x106   :  { %v136_v16 = vadd.f32 %v252_v12, %v135_v15 }
 0x107   :  { %v145_v17 = vmax.f32 %v141_v14, 0.0 }
 0x108   :  { %v144_v18 = vmax.f32 %v136_v16, 0.0 }
 0x10a   :  { %v294_v19 = vpack.c.bf16 %v145_v17, %v144_v18 }
 0x10c   :  { %296 = vmatpush3.bf16.xpose.msk.msra.mxu1 %vm295_vm3, %v294_v19 }
 0x113   :  { %283 = vmatmul.mubr.msk.f32.vlgmr.msra.gmra.mrb[0].mxu1 %vm147_vm2, %v146_v20 }
 0x1e6   :  { %v223_v22 = vpop.f32.mrb[0].mxu1 }
 0x1e7   :  { %v233_v23 = vadd.f32 %v231_v21, %v223_v22  ;;  %v284_v24 = vpop.f32.mrb[1].mxu1 }
 0x1e9   :  { %235 = vst.msk [vmem:[#allocation7] sm:$0x3] %vm234_vm4, %v233_v23 }
 0x1ea   :  { %362 = shalt.err (!%p359_p6)
}
 0x1eb   :  { %s363_s3 = scalar_lea.hbm %s468_s5, 32 }
 0x1ec   :  { %p364_p7 = scmp.ne.s32.totalorder %s468_s5, %s363_s3  ;;  %p367_p8 = scmp.lt.u32.totalorder %s363_s3, %s468_s5 }
 0x1ee   :  { %p369_p9 = pnand %p367_p8, %p364_p7 }
 0x1f0   :  { %372 = shalt.err (!%p369_p9)
}
 0x1f1   :  { %245 = dma.vmem_to_hbm [thread:$0]  %s243_s23, 32, %s468_s5, [#allocation4]  }
 0x1f2   :  { %377 = dma.done.wait [#allocation4], 32  }
 0x1f3   :  { %378 = vsyncadd [#allocation4], 4294967264 }
 0x1f4   :  { %249 = vsyncpa [#allocation3], 1 }
 0x1f5   :  { %250 = vsyncpa [#allocation6], 1 }
 0x1f6   :  { %251 = vsyncpa [#allocation4], 1 }

</bundles_post_ra>
